<compile_context>
chip_gen: v5e
topology: v5e:2x2
jax: 0.10.0
libtpu: 0.0.40
codegen_flags: <defaults>
</compile_context>

<pallas_src>
import math

import jax
import jax.numpy as jnp
from jax.experimental import pallas as pl
from jax.experimental.pallas import tpu as pltpu

_DATASET_SCALE = 8.0
_GRIPPER_DEPTH = 0.08 * _DATASET_SCALE  # 0.64, matches torch gripper_depth_T[2, 3]
_EPS = 1e-5
_LANE = 128
_SUB = 8


def _grasp_score_kernel(h_ref, cos_ref, se_ref):
    """Clamped cosine (per element) + per-step partial translation SE.

    h_ref  : (12, tb, 128) f32 — rows [zx,zy,zz,tx,ty,tz, zix,ziy,ziz,tix,tiy,tiz],
             batch folded into (sublane, lane) => every slab is a dense (tb,128).
    cos_ref: (tb, 128) f32 — clamped cosine per element.
    se_ref : (8, 128) f32 — partial sums of the translation squared error for
             this grid step (padded elements contribute exactly 0).
    """
    zx, zy, zz = h_ref[0], h_ref[1], h_ref[2]
    tx, ty, tz = h_ref[3], h_ref[4], h_ref[5]
    zix, ziy, ziz = h_ref[6], h_ref[7], h_ref[8]
    tix, tiy, tiz = h_ref[9], h_ref[10], h_ref[11]

    # g_T = [R|t; 0 0 0 1] @ gripper_depth_T ==> translation shifts by
    # GRIPPER_DEPTH * (raw third column of R).  Kept as scalar axpy on the VPU.
    dx = (tx + _GRIPPER_DEPTH * zx) - tix
    dy = (ty + _GRIPPER_DEPTH * zy) - tiy
    dz = (tz + _GRIPPER_DEPTH * zz) - tiz
    se = dx * dx + dy * dy + dz * dz                       # (tb, 128)

    # Fold the tb sublane rows into one (8, 128) partial-sum tile (tile-aligned
    # static slices; one extra add per element).  Padded lanes are zero.
    tb = se.shape[0]
    part = se[0:_SUB]
    for g in range(1, tb // _SUB):
        part = part + se[_SUB * g:_SUB * (g + 1)]
    se_ref[...] = part

    # Normalize both z axes (norm + eps, exactly as in torch) and dot them.
    # Full-precision divide: arccos amplifies error near |cos|~1 and the
    # denominator can be ~1e-10 for degenerate inputs; the kernel is HBM-bound
    # anyway so an approximate reciprocal buys nothing.
    n = jnp.sqrt(zx * zx + zy * zy + zz * zz) + _EPS
    ni = jnp.sqrt(zix * zix + ziy * ziy + ziz * ziz) + _EPS
    cos = (zx * zix + zy * ziy + zz * ziz) / (n * ni)
    cos_ref[...] = jnp.clip(cos, -1.0 + _EPS, 1.0 - _EPS)


def _round_up(x, m):
    return ((x + m - 1) // m) * m


def grasp_refine_score(H, H_i, loss_rot_weight=1.0, loss_trans_weight=1.0,
                       block_rows=256):
    """Equivalent of GraspRefineScoreNet.forward(H, H_i). Returns a scalar.

    block_rows: sublane rows (of 128 lanes each) per grid step, i.e.
    block_rows*128 batch elements per step (default 32768).
    """
    B = H.shape[0]

    # Only the 12 scalars actually read per pair of transforms go through HBM:
    # [z(H), t(H), z(H_i), t(H_i)], batch on the fast axis.
    # TODO(synk): this slice/concat/transpose pre-pass is now the dominant HBM
    # cost (reads the full 4x4s); ideally the producer emits this layout.
    h12 = jnp.concatenate(
        [H[:, :3, 2], H[:, :3, 3], H_i[:, :3, 2], H_i[:, :3, 3]], axis=1)
    h12 = h12.astype(jnp.float32).T                         # (12, B)

    # Fold batch into (rows, 128): rows on sublanes, 128 lanes per row.
    rows = -(-B // _LANE)
    tb = max(_SUB, min(_round_up(block_rows, _SUB), _round_up(rows, _SUB)))
    if rows > _SUB:
        # Ensure >=2 grid steps so "parallel" can use both v7x TensorCores.
        tb = min(tb, _round_up(-(-rows // 2), _SUB))
    rows_p = _round_up(rows, tb)
    Bp = rows_p * _LANE
    if Bp != B:
        h12 = jnp.pad(h12, ((0, 0), (0, Bp - B)))           # zero pad is safe
    h12 = h12.reshape(12, rows_p, _LANE)

    grid = (rows_p // tb,)

    cos, se_parts = pl.pallas_call(
        _grasp_score_kernel,
        out_shape=(
            jax.ShapeDtypeStruct((rows_p, _LANE), jnp.float32),
            jax.ShapeDtypeStruct((grid[0] * _SUB, _LANE), jnp.float32),
        ),
        grid=grid,
        in_specs=[pl.BlockSpec((12, tb, _LANE), lambda i: (0, i, 0))],
        out_specs=(
            pl.BlockSpec((tb, _LANE), lambda i: (i, 0)),
            pl.BlockSpec((_SUB, _LANE), lambda i: (i, 0)),
        ),
        compiler_params=pltpu.CompilerParams(
            dimension_semantics=("parallel",)),
    )(h12)

    # TODO(synk): acos has no reliable Mosaic/Pallas-TPU lowering; applied in
    # plain JAX on the tiny (B,) vector of clamped cosines produced in-kernel.
    z_angles = jnp.arccos(cos.reshape(-1)[:B])
    rot_loss = jnp.mean(jax.nn.relu(jnp.abs(z_angles) - math.pi / 4.0))
    trans_loss = jnp.sum(se_parts) / (B * 3.0)              # MSELoss(mean)
    return loss_rot_weight * rot_loss + loss_trans_weight * trans_loss


def _reference(H, H_i):
    """Pure-JAX transcription of the PyTorch forward, for validation."""
    eps = 1e-5
    g_t = H[:, :3, 3]
    g_ti = H_i[:, :3, 3]
    R = H[:, :3, :3]
    g_T = jnp.tile(jnp.eye(4, dtype=H.dtype)[None], (H.shape[0], 1, 1))
    g_T = g_T.at[:, :3, :3].set(R).at[:, :3, 3].set(g_t)
    gd = jnp.eye(4, dtype=H.dtype).at[2, 3].set(_GRIPPER_DEPTH)
    g_T = jnp.einsum('bij,jk->bik', g_T, gd)
    g_t_new = g_T[:, :3, 3]
    z = R[:, :3, 2]
    zi = H_i[:, :3, :3][:, :3, 2]
    z = z / (jnp.linalg.norm(z, axis=1, keepdims=True) + eps)
    zi = zi / (jnp.linalg.norm(zi, axis=1, keepdims=True) + eps)
    ang = jnp.arccos(jnp.clip(jnp.sum(z * zi, axis=1), -1.0 + eps, 1.0 - eps))
    rot_loss = jnp.mean(jax.nn.relu(jnp.abs(ang) - math.pi / 4.0))
    trans_loss = jnp.mean((g_t_new - g_ti) ** 2)
    return rot_loss + trans_loss


if __name__ == "__main__":
    key = jax.random.PRNGKey(0)

    # B=8: single-block path with heavy padding.
    # B=200: single block, >1 lane row worth of padding.
    # B=1500: multi-step grid (2 steps) exercising the parallel axis + partial sums.
    for B in (8, 200, 1500):
        k1, k2 = jax.random.split(jax.random.fold_in(key, B))
        # Synthetic homogeneous transforms; forward never reads the bottom row.
        H = jax.random.normal(k1, (B, 4, 4), dtype=jnp.float32)
        H_i = jax.random.normal(k2, (B, 4, 4), dtype=jnp.float32)

        out = jax.block_until_ready(grasp_refine_score(H, H_i))
        ref = jax.block_until_ready(_reference(H, H_i))

        assert out.shape == () and out.dtype == jnp.float32
        assert jnp.allclose(out, ref, rtol=1e-5, atol=1e-5), (B, out, ref)

    print("KERNEL_OK")
</pallas_src>

<mosaic_0001>
module attributes {stable_mosaic.version = 11 : i64} {
  func.func @_grasp_score_kernel(%arg0: i32, %arg1: memref<12x8x128xf32, #tpu.memory_space<vmem>>, %arg2: memref<8x128xf32, #tpu.memory_space<vmem>>, %arg3: memref<8x128xf32, #tpu.memory_space<vmem>>) attributes {dimension_semantics = [#tpu.dimension_semantics<parallel>], iteration_bounds = array<i64: 1>, scalar_prefetch = 0 : i64, scratch_operands = 0 : i64, tpu.core_type = #tpu.core_type<tc>, window_params = [{transform_indices = @transform_0, window_bounds = array<i64: 12, 8, 128>}, {transform_indices = @transform_1, window_bounds = array<i64: 8, 128>}, {transform_indices = @transform_2, window_bounds = array<i64: 8, 128>}]} {
    %c0 = arith.constant 0 : index
    %c0_0 = arith.constant 0 : index
    %c0_1 = arith.constant 0 : index
    %0 = vector.load %arg1[%c0, %c0_0, %c0_1] : memref<12x8x128xf32, #tpu.memory_space<vmem>>, vector<1x8x128xf32>
    %1 = vector.shape_cast %0 : vector<1x8x128xf32> to vector<8x128xf32>
    %c1 = arith.constant 1 : index
    %c0_2 = arith.constant 0 : index
    %c0_3 = arith.constant 0 : index
    %2 = vector.load %arg1[%c1, %c0_2, %c0_3] : memref<12x8x128xf32, #tpu.memory_space<vmem>>, vector<1x8x128xf32>
    %3 = vector.shape_cast %2 : vector<1x8x128xf32> to vector<8x128xf32>
    %c2 = arith.constant 2 : index
    %c0_4 = arith.constant 0 : index
    %c0_5 = arith.constant 0 : index
    %4 = vector.load %arg1[%c2, %c0_4, %c0_5] : memref<12x8x128xf32, #tpu.memory_space<vmem>>, vector<1x8x128xf32>
    %5 = vector.shape_cast %4 : vector<1x8x128xf32> to vector<8x128xf32>
    %c3 = arith.constant 3 : index
    %c0_6 = arith.constant 0 : index
    %c0_7 = arith.constant 0 : index
    %6 = vector.load %arg1[%c3, %c0_6, %c0_7] : memref<12x8x128xf32, #tpu.memory_space<vmem>>, vector<1x8x128xf32>
    %7 = vector.shape_cast %6 : vector<1x8x128xf32> to vector<8x128xf32>
    %c4 = arith.constant 4 : index
    %c0_8 = arith.constant 0 : index
    %c0_9 = arith.constant 0 : index
    %8 = vector.load %arg1[%c4, %c0_8, %c0_9] : memref<12x8x128xf32, #tpu.memory_space<vmem>>, vector<1x8x128xf32>
    %9 = vector.shape_cast %8 : vector<1x8x128xf32> to vector<8x128xf32>
    %c5 = arith.constant 5 : index
    %c0_10 = arith.constant 0 : index
    %c0_11 = arith.constant 0 : index
    %10 = vector.load %arg1[%c5, %c0_10, %c0_11] : memref<12x8x128xf32, #tpu.memory_space<vmem>>, vector<1x8x128xf32>
    %11 = vector.shape_cast %10 : vector<1x8x128xf32> to vector<8x128xf32>
    %c6 = arith.constant 6 : index
    %c0_12 = arith.constant 0 : index
    %c0_13 = arith.constant 0 : index
    %12 = vector.load %arg1[%c6, %c0_12, %c0_13] : memref<12x8x128xf32, #tpu.memory_space<vmem>>, vector<1x8x128xf32>
    %13 = vector.shape_cast %12 : vector<1x8x128xf32> to vector<8x128xf32>
    %c7 = arith.constant 7 : index
    %c0_14 = arith.constant 0 : index
    %c0_15 = arith.constant 0 : index
    %14 = vector.load %arg1[%c7, %c0_14, %c0_15] : memref<12x8x128xf32, #tpu.memory_space<vmem>>, vector<1x8x128xf32>
    %15 = vector.shape_cast %14 : vector<1x8x128xf32> to vector<8x128xf32>
    %c8 = arith.constant 8 : index
    %c0_16 = arith.constant 0 : index
    %c0_17 = arith.constant 0 : index
    %16 = vector.load %arg1[%c8, %c0_16, %c0_17] : memref<12x8x128xf32, #tpu.memory_space<vmem>>, vector<1x8x128xf32>
    %17 = vector.shape_cast %16 : vector<1x8x128xf32> to vector<8x128xf32>
    %c9 = arith.constant 9 : index
    %c0_18 = arith.constant 0 : index
    %c0_19 = arith.constant 0 : index
    %18 = vector.load %arg1[%c9, %c0_18, %c0_19] : memref<12x8x128xf32, #tpu.memory_space<vmem>>, vector<1x8x128xf32>
    %19 = vector.shape_cast %18 : vector<1x8x128xf32> to vector<8x128xf32>
    %c10 = arith.constant 10 : index
    %c0_20 = arith.constant 0 : index
    %c0_21 = arith.constant 0 : index
    %20 = vector.load %arg1[%c10, %c0_20, %c0_21] : memref<12x8x128xf32, #tpu.memory_space<vmem>>, vector<1x8x128xf32>
    %21 = vector.shape_cast %20 : vector<1x8x128xf32> to vector<8x128xf32>
    %c11 = arith.constant 11 : index
    %c0_22 = arith.constant 0 : index
    %c0_23 = arith.constant 0 : index
    %22 = vector.load %arg1[%c11, %c0_22, %c0_23] : memref<12x8x128xf32, #tpu.memory_space<vmem>>, vector<1x8x128xf32>
    %23 = vector.shape_cast %22 : vector<1x8x128xf32> to vector<8x128xf32>
    %cst = arith.constant 6.400000e-01 : f32
    %24 = vector.broadcast %cst : f32 to vector<8x128xf32>
    %25 = arith.mulf %24, %1 : vector<8x128xf32>
    %26 = arith.addf %7, %25 : vector<8x128xf32>
    %27 = arith.subf %26, %19 : vector<8x128xf32>
    %cst_24 = arith.constant 6.400000e-01 : f32
    %28 = vector.broadcast %cst_24 : f32 to vector<8x128xf32>
    %29 = arith.mulf %28, %3 : vector<8x128xf32>
    %30 = arith.addf %9, %29 : vector<8x128xf32>
    %31 = arith.subf %30, %21 : vector<8x128xf32>
    %cst_25 = arith.constant 6.400000e-01 : f32
    %32 = vector.broadcast %cst_25 : f32 to vector<8x128xf32>
    %33 = arith.mulf %32, %5 : vector<8x128xf32>
    %34 = arith.addf %11, %33 : vector<8x128xf32>
    %35 = arith.subf %34, %23 : vector<8x128xf32>
    %36 = arith.mulf %27, %27 : vector<8x128xf32>
    %37 = arith.mulf %31, %31 : vector<8x128xf32>
    %38 = arith.addf %36, %37 : vector<8x128xf32>
    %39 = arith.mulf %35, %35 : vector<8x128xf32>
    %40 = arith.addf %38, %39 : vector<8x128xf32>
    %c0_26 = arith.constant 0 : index
    %c0_27 = arith.constant 0 : index
    %41 = vector.load %arg3[%c0_26, %c0_27] : memref<8x128xf32, #tpu.memory_space<vmem>>, vector<8x128xf32>
    tpu.vector_store %arg3[%c0_26, %c0_27], %40 {strides = array<i32>} : memref<8x128xf32, #tpu.memory_space<vmem>>, vector<8x128xf32>,
    %42 = arith.mulf %1, %1 : vector<8x128xf32>
    %43 = arith.mulf %3, %3 : vector<8x128xf32>
    %44 = arith.addf %42, %43 : vector<8x128xf32>
    %45 = arith.mulf %5, %5 : vector<8x128xf32>
    %46 = arith.addf %44, %45 : vector<8x128xf32>
    %47 = math.sqrt %46 : vector<8x128xf32>
    %cst_28 = arith.constant 9.99999974E-6 : f32
    %48 = vector.broadcast %cst_28 : f32 to vector<8x128xf32>
    %49 = arith.addf %47, %48 : vector<8x128xf32>
    %50 = arith.mulf %13, %13 : vector<8x128xf32>
    %51 = arith.mulf %15, %15 : vector<8x128xf32>
    %52 = arith.addf %50, %51 : vector<8x128xf32>
    %53 = arith.mulf %17, %17 : vector<8x128xf32>
    %54 = arith.addf %52, %53 : vector<8x128xf32>
    %55 = math.sqrt %54 : vector<8x128xf32>
    %cst_29 = arith.constant 9.99999974E-6 : f32
    %56 = vector.broadcast %cst_29 : f32 to vector<8x128xf32>
    %57 = arith.addf %55, %56 : vector<8x128xf32>
    %58 = arith.mulf %1, %13 : vector<8x128xf32>
    %59 = arith.mulf %3, %15 : vector<8x128xf32>
    %60 = arith.addf %58, %59 : vector<8x128xf32>
    %61 = arith.mulf %5, %17 : vector<8x128xf32>
    %62 = arith.addf %60, %61 : vector<8x128xf32>
    %63 = arith.mulf %49, %57 : vector<8x128xf32>
    %64 = arith.divf %62, %63 : vector<8x128xf32>
    %cst_30 = arith.constant -0.999989986 : f32
    %cst_31 = arith.constant 0.999989986 : f32
    %65 = vector.broadcast %cst_30 : f32 to vector<8x128xf32>
    %66 = arith.maximumf %65, %64 : vector<8x128xf32>
    %67 = vector.broadcast %cst_31 : f32 to vector<8x128xf32>
    %68 = arith.minimumf %67, %66 : vector<8x128xf32>
    %c0_32 = arith.constant 0 : index
    %c0_33 = arith.constant 0 : index
    %69 = vector.load %arg2[%c0_32, %c0_33] : memref<8x128xf32, #tpu.memory_space<vmem>>, vector<8x128xf32>
    tpu.vector_store %arg2[%c0_32, %c0_33], %68 {strides = array<i32>} : memref<8x128xf32, #tpu.memory_space<vmem>>, vector<8x128xf32>,
    return
  }
  func.func @transform_0(%arg0: i32) -> (i32, i32, i32) {
    %c0_i32 = arith.constant 0 : i32
    %c0_i32_0 = arith.constant 0 : i32
    %c0_i32_1 = arith.constant 0 : i32
    return %c0_i32, %arg0, %c0_i32_0 : i32, i32, i32
  }
  func.func @transform_1(%arg0: i32) -> (i32, i32) {
    %c0_i32 = arith.constant 0 : i32
    %c0_i32_0 = arith.constant 0 : i32
    return %arg0, %c0_i32 : i32, i32
  }
  func.func @transform_2(%arg0: i32) -> (i32, i32) {
    %c0_i32 = arith.constant 0 : i32
    %c0_i32_0 = arith.constant 0 : i32
    return %arg0, %c0_i32 : i32, i32
  }
}

</mosaic_0001>

<bundles_post_ra>
// kernel: tpu_custom_call.1
= control target key start
LH: loop header
LB: loop body
LE: loop exit
PB: predicated region body
PF: predicated region fallthrough
CT: control target
= control target key end

     0   :  { %8 = vsyncpa [#allocation3], 0  ;;  %s296_s0 = inlined_call_operand.hbm [shape: f32[12,8,128], index: 0, kind: input, shape index: {}]   ;;  %s297_s1 = inlined_call_operand.hbm [shape: f32[8,128], index: 1, kind: output, shape index: {0}]   ;;  %s298_s2 = inlined_call_operand.hbm [shape: f32[8,128], index: 2, kind: output, shape index: {1}]  }
   0x1   :  { %9 = vsyncpa [#allocation4], 0 }
   0x2   :  { %10 = vsyncpa [#allocation7], 0  ;;  %s15_s11 = sshll.u32 %s296_s0, 4  ;;  %s249_s12 = smov [#allocation2]   ;;  %s16_s11 = int_to_ptr.hbm [resolvable:$true] %s15_s11 }
   0x3   :  { %s17_s13 = sshll.u32 %s249_s12, 4  ;;  %s250_s14 = smov 128   ;;  %s18_s13 = int_to_ptr.vmem [resolvable:$true] %s17_s13 }
   0x4   :  { %s251_s15 = smov 8  }
   0x5   :  { %23 = dma.hbm_to_vmem [thread:$0]  %s16_s11, 1536, %s18_s13, [#allocation3], %s250_s14, %s250_s14, %s251_s15  }
   0x6   :  { %243 = dma.done.wait [#allocation3], 1536  }
   0x7   :  { %244 = vsyncadd [#allocation3], 4294965760  ;;  %v272_v0 = vld [vmem:[#allocation2] sm:$0xff]  ;;  %v274_v1 = vld [vmem:[#allocation2 + $0x8] sm:$0xff]  ;;  %s252_s0 = smov [#allocation6]   ;;  %s144_s19 = sshll.u32 %s298_s2, 4  ;;  %s145_s19 = int_to_ptr.hbm [resolvable:$true] %s144_s19 }
   0x8   :  { %v276_v2 = vld [vmem:[#allocation2 + $0x10] sm:$0xff]  ;;  %v34_v3 = vld [vmem:[#allocation2 + $0x18] sm:$0xff]  ;;  %v36_v4 = vld [vmem:[#allocation2 + $0x20] sm:$0xff]  ;;  %v51_v5 = vmul.f32 0.64, %v272_v0  ;;  %v66_v6 = vmul.f32 %v272_v0, %v272_v0  ;;  %v67_v7 = vmul.f32 %v274_v1, %v274_v1  ;;  %s142_s16 = sshll.u32 %s252_s0, 4  ;;  %s143_s16 = int_to_ptr.vmem [resolvable:$true] %s142_s16 }
   0x9   :  { %v69_v8 = vmul.f32 %v276_v2, %v276_v2  ;;  %v38_v9 = vld [vmem:[#allocation2 + $0x28] sm:$0xff]  ;;  %v48_v11 = vld [vmem:[#allocation2 + $0x50] sm:$0xff]  ;;  %v54_v12 = vmul.f32 0.64, %v274_v1  ;;  %v57_v14 = vmul.f32 0.64, %v276_v2 }
   0xa   :  { %v46_v10 = vld [vmem:[#allocation2 + $0x48] sm:$0xff]  ;;  %v52_v13 = vadd.f32 %v51_v5, %v34_v3  ;;  %v68_v15 = vadd.f32 %v67_v7, %v66_v6  ;;  %v40_v16 = vld [vmem:[#allocation2 + $0x30] sm:$0xff]  ;;  %v42_v17 = vld [vmem:[#allocation2 + $0x38] sm:$0xff]  ;;  %s253_s2 = smov [#allocation5]   ;;  %s133_s23 = sshll.u32 %s297_s1, 4  ;;  %s134_s23 = int_to_ptr.hbm [resolvable:$true] %s133_s23 }
   0xb   :  { %v44_v18 = vld [vmem:[#allocation2 + $0x40] sm:$0xff]  ;;  %v50_v19 = vld [vmem:[#allocation2 + $0x58] sm:$0xff]  ;;  %v55_v20 = vadd.f32 %v54_v12, %v36_v4  ;;  %v84_v21 = vmul.f32 %v40_v16, %v40_v16  ;;  %v85_v22 = vmul.f32 %v42_v17, %v42_v17  ;;  %v58_v25 = vadd.f32 %v57_v14, %v38_v9  ;;  %s131_s20 = sshll.u32 %s253_s2, 4  ;;  %s132_s20 = int_to_ptr.vmem [resolvable:$true] %s131_s20 }
   0xc   :  { %v87_v23 = vmul.f32 %v44_v18, %v44_v18  ;;  %v53_v24 = vsub.f32 %v52_v13, %v46_v10  ;;  %v70_v26 = vadd.f32 %v69_v8, %v68_v15  ;;  %v102_v59 = vmul.f32 %v40_v16, %v272_v0 }
   0xd   :  { %v56_v27 = vsub.f32 %v55_v20, %v48_v11  ;;  %v86_v28 = vadd.f32 %v85_v22, %v84_v21  ;;  %v59_v29 = vsub.f32 %v58_v25, %v50_v19  ;;  %v103_v60 = vmul.f32 %v42_v17, %v274_v1 }
   0xe   :  { %v60_v30 = vmul.f32 %v53_v24, %v53_v24  ;;  %165 = vrsqrt.f32 %v70_v26  ;;  %vm78_vm0 = vcmp.eq.f32.partialorder %v70_v26, inf  ;;  %v81_v46 = vand.u32 2147483648, %v70_v26 }
   0xf   :  { %v61_v31 = vmul.f32 %v56_v27, %v56_v27  ;;  %v88_v32 = vadd.f32 %v87_v23, %v86_v28  ;;  %v63_v33 = vmul.f32 %v59_v29, %v59_v29  ;;  %vm80_vm1 = vcmp.eq.f32.partialorder %v70_v26, 0.0 }
  0x10   :  { %v104_v63 = vadd.f32 %v103_v60, %v102_v59  ;;  %v105_v3 = vmul.f32 %v44_v18, %v276_v2 }
  0x11   :  { %v62_v34 = vadd.f32 %v61_v31, %v60_v30  ;;  %167 = vrsqrt.f32 %v88_v32  ;;  %vm96_vm2 = vcmp.eq.f32.partialorder %v88_v32, inf  ;;  %v99_v51 = vand.u32 2147483648, %v88_v32 }
  0x12   :  { %vm98_vm3 = vcmp.eq.f32.partialorder %v88_v32, 0.0  ;;  %v106_v9 = vadd.f32 %v105_v3, %v104_v63 }
  0x13   :  { %v64_v35 = vadd.f32 %v63_v33, %v62_v34 }
  0x14   :  { %v166_v36 = vpop.eup %165 }
  0x15   :  { %65 = vst [vmem:[#allocation6] sm:$0xff] %v64_v35  ;;  %v72_v37 = vmul.f32 %v166_v36, %v70_v26 }
  0x16   :  { %147 = dma.vmem_to_hbm [thread:$0]  %s143_s16, 128, %s145_s19, [#allocation7]  }
  0x17   :  { %v168_v38 = vpop.eup %167  ;;  %v73_v39 = vmul.f32 %v166_v36, %v72_v37 }
  0x18   :  { %v90_v40 = vmul.f32 %v168_v38, %v88_v32 }
  0x19   :  { %v74_v41 = vmul.f32 0.5, %v73_v39 }
  0x1a   :  { %v91_v42 = vmul.f32 %v168_v38, %v90_v40 }
  0x1b   :  { %v75_v43 = vsub.f32 1.5, %v74_v41 }
  0x1c   :  { %v92_v44 = vmul.f32 0.5, %v91_v42 }
  0x1d   :  { %v76_v45 = vmul.f32 %v166_v36, %v75_v43 }
  0x1e   :  { %v93_v47 = vsub.f32 1.5, %v92_v44 }
  0x1f   :  { %v77_v48 = vmul.f32 %v76_v45, %v70_v26 }
  0x20   :  { %v94_v49 = vmul.f32 %v168_v38, %v93_v47 }
  0x21   :  { %v79_v50 = vsel %vm78_vm0, %v70_v26, %v77_v48 }
  0x22   :  { %v82_v52 = vsel %vm80_vm1, %v81_v46, %v79_v50  ;;  %v95_v53 = vmul.f32 %v94_v49, %v88_v32 }
  0x23   :  { %v83_v54 = vadd.f32 1e-05, %v82_v52 }
  0x24   :  { %v97_v55 = vsel %vm96_vm2, %v88_v32, %v95_v53 }
  0x25   :  { %v100_v56 = vsel %vm98_vm3, %v99_v51, %v97_v55 }
  0x26   :  { %v101_v57 = vadd.f32 1e-05, %v100_v56 }
  0x28   :  { %v107_v58 = vmul.f32 %v101_v57, %v83_v54 }
  0x2a   :  { %169 = vrcp.f32 %v107_v58  ;;  %v119_v4 = vand.u32 2147483648, %v107_v58  ;;  %vm113_vm4 = vweird.f32 %v107_v58  ;;  %v117_v6 = vand.u32 2147483647, %v107_v58 }
  0x2c   :  { %v120_v8 = vor.u32 1.1754944e-38, %v119_v4  ;;  %vm118_vm7 = vcmp.eq.f32.partialorder %v117_v6, 8.507059e+37 }
  0x30   :  { %v170_v61 = vpop.eup %169 }
  0x31   :  { %v109_v62 = vmul.f32 %v170_v61, %v107_v58  ;;  %vm114_vm5 = vweird.f32 %v170_v61 }
  0x32   :  { %vm115_vm6 = vmor %vm113_vm4, %vm114_vm5 }
  0x33   :  { %v110_v5 = vsub.f32 1.0, %v109_v62 }
  0x35   :  { %v111_v7 = vmul.f32 %v170_v61, %v110_v5 }
  0x37   :  { %v112_v10 = vadd.f32 %v170_v61, %v111_v7 }
  0x39   :  { %v116_v11 = vsel %vm115_vm6, %v170_v61, %v112_v10 }
  0x3a   :  { %v121_v0 = vsel %vm118_vm7, %v120_v8, %v116_v11 }
  0x3b   :  { %v122_v1 = vmul.f32 %v121_v0, %v106_v9 }
  0x3d   :  { %v159_v2 = vclamps-f32 %v122_v1, 0.99999 }
  0x3f   :  { %125 = vst [vmem:[#allocation5] sm:$0xff] %v159_v2 }
  0x40   :  { %136 = dma.vmem_to_hbm [thread:$0]  %s132_s20, 128, %s134_s23, [#allocation4]  }
  0x41   :  { %245 = dma.done.wait [#allocation4], 128  }
  0x42   :  { %246 = vsyncadd [#allocation4], 4294967168 }
  0x43   :  { %247 = dma.done.wait [#allocation7], 128  }
  0x44   :  { %248 = vsyncadd [#allocation7], 4294967168 }
  0x45   :  { %156 = vsyncpa [#allocation3], 1 }
  0x46   :  { %157 = vsyncpa [#allocation4], 1 }
  0x47   :  { %158 = vsyncpa [#allocation7], 1 }

</bundles_post_ra>
